<compile_context>
chip_gen: v6e
topology: v6e:2x2x1
jax: 0.10.0
libtpu: 0.0.40
codegen_flags: <defaults>
</compile_context>

<pallas_src>
from typing import Dict, Optional

import jax
import jax.numpy as jnp
from jax import lax
from jax.experimental import pallas as pl
from jax.experimental.pallas import tpu as pltpu

_LANE = 128
_SUBLANE = 16  # covers bf16 sublane packing


def _round_up(x: int, m: int) -> int:
    return ((x + m - 1) // m) * m


def _round_down(x: int, m: int) -> int:
    return (x // m) * m


def _vmem_capacity_bytes() -> int:
    """Physical VMEM per TensorCore, with a conservative fallback (v7x)."""
    try:
        cap = getattr(pltpu.get_tpu_info(), "vmem_capacity_bytes", None)
        if cap:
            return int(cap)
    except Exception:
        pass
    return 64 * 1024 * 1024


def _native_bf16_ok() -> bool:
    """bf16 VPU compare/select is native on v6e/v7x; upcast elsewhere."""
    try:
        kind = jax.devices()[0].device_kind.lower()
        return ("v6" in kind) or ("v7" in kind)
    except Exception:
        return False


def _select_compute_dtype(dtype) -> jnp.dtype:
    dtype = jnp.dtype(dtype)
    if dtype in (jnp.dtype(jnp.float32), jnp.dtype(jnp.int32)):
        return dtype
    if dtype == jnp.dtype(jnp.bfloat16):
        return dtype if _native_bf16_ok() else jnp.dtype(jnp.float32)
    if jnp.issubdtype(dtype, jnp.integer):
        return jnp.dtype(jnp.int32)  # exact for <=32-bit integer logits
    return jnp.dtype(jnp.float32)


def _lowest_value(dtype):
    if jnp.issubdtype(jnp.dtype(dtype), jnp.floating):
        return float("-inf")
    return int(jnp.iinfo(dtype).min)


def _choose_tiles(m: int, c: int, itemsize: int, vmem_cap: int):
    """Pick (tile_rows, tile_c) against the per-generation VMEM budget."""
    big_vmem = vmem_cap >= (96 << 20)          # v5e/v6e: 128 MiB, v7x: 64 MiB
    c_tile_cap = 4096 if big_vmem else 2048    # 128-aligned class chunks
    tile_c = c if c <= c_tile_cap else c_tile_cap

    bytes_per_row = max(1, tile_c * itemsize)
    target_bytes = (16 << 20) if big_vmem else (8 << 20)   # per grid step
    target_rows = max(1, target_bytes // bytes_per_row)
    # Double-buffered input tile must fit in half of physical VMEM.
    vmem_rows = max(1, (vmem_cap // 2) // (2 * bytes_per_row))
    tile_rows = max(_LANE, _round_down(min(target_rows, vmem_rows), _LANE))

    m_aligned = _round_up(m, _SUBLANE)
    if m_aligned <= tile_rows:
        # Single row tile: shrink to the (sublane-aligned) row count.
        return m_aligned, tile_c

    # Multiple row tiles: keep tile_rows a multiple of 128.
    two_cores = not big_vmem                   # heuristic: v7x has 2 TCs
    min_tiles = 4 if two_cores else 2          # only v7x needs >=4 for megacore
    while tile_rows > _LANE and -(-m_aligned // tile_rows) < min_tiles:
        tile_rows = max(_LANE, _round_down(tile_rows // 2, _LANE))
    if two_cores:
        # Prefer an even number of row tiles so both TensorCores stay busy.
        n_tiles = -(-m // tile_rows)
        floor = max(_LANE, tile_rows // 2)
        while n_tiles % 2 == 1 and n_tiles > 1 and tile_rows > floor:
            tile_rows -= _LANE
            n_tiles = -(-m // tile_rows)
    return tile_rows, tile_c


def _make_single_chunk_kernel(compute_dtype):
    """Whole class axis in one block: no running state, no merges."""

    def kernel(x_ref, out_ref):
        x = x_ref[...]
        if x.dtype != compute_dtype:
            x = x.astype(compute_dtype)
        tile_c = x.shape[-1]
        cmax = jnp.max(x, axis=-1, keepdims=True)                  # (rows, 1)
        col = lax.broadcasted_iota(jnp.int32, x.shape, 1)
        hit = x == cmax
        out_ref[...] = jnp.min(jnp.where(hit, col, jnp.int32(tile_c)),
                               axis=-1, keepdims=True)

    return kernel


def _make_online_kernel(c_total: int, tile_c: int, n_kc: int,
                        fill, compute_dtype):
    """Online argmax over 128-aligned class chunks.

    State (running max / running argmax) lives in sublane-major (rows, 1)
    scratch; only the ragged last chunk pays the column mask; the int32
    result is written once per row tile at the last chunk.
    """
    ragged = (c_total % tile_c) != 0

    def _chunk_update(x, kc, max_sc, arg_sc, mask_cols: bool):
        col = lax.broadcasted_iota(jnp.int32, x.shape, 1)
        if mask_cols:
            valid = (col + kc * tile_c) < c_total
            x = jnp.where(valid, x, fill)
        cmax = jnp.max(x, axis=-1, keepdims=True)                  # (rows, 1)
        hit = x == cmax
        carg = jnp.min(jnp.where(hit, col, jnp.int32(tile_c)),
                       axis=-1, keepdims=True) + kc * tile_c       # global idx
        better = cmax > max_sc[...]        # strict > keeps earliest chunk/tie
        max_sc[...] = jnp.where(better, cmax, max_sc[...])
        arg_sc[...] = jnp.where(better, carg, arg_sc[...])

    def kernel(x_ref, out_ref, max_sc, arg_sc):
        kc = pl.program_id(1)

        @pl.when(kc == 0)
        def _():
            max_sc[...] = jnp.full_like(max_sc, fill)
            arg_sc[...] = jnp.zeros_like(arg_sc)

        x = x_ref[...]
        if x.dtype != compute_dtype:
            x = x.astype(compute_dtype)

        if ragged:
            @pl.when(kc < n_kc - 1)
            def _():
                _chunk_update(x, kc, max_sc, arg_sc, mask_cols=False)

            @pl.when(kc == n_kc - 1)
            def _():
                _chunk_update(x, kc, max_sc, arg_sc, mask_cols=True)
        else:
            _chunk_update(x, kc, max_sc, arg_sc, mask_cols=False)

        @pl.when(kc == n_kc - 1)
        def _():
            out_ref[...] = arg_sc[...]

    return kernel


def argmax_last_dim(logits_2d: jnp.ndarray) -> jnp.ndarray:
    """Argmax over the last axis of an [M, C] array via a Pallas TPU kernel."""
    m, c = logits_2d.shape
    itemsize = jnp.dtype(logits_2d.dtype).itemsize
    compute_dtype = _select_compute_dtype(logits_2d.dtype)
    fill = _lowest_value(compute_dtype)
    vmem_cap = _vmem_capacity_bytes()

    tile_rows, tile_c = _choose_tiles(m, c, itemsize, vmem_cap)
    n_row = pl.cdiv(m, tile_rows)
    n_kc = pl.cdiv(c, tile_c)

    needed = 2 * tile_rows * tile_c * itemsize + tile_rows * 8 + (1 << 20)
    vmem_limit = int(min(vmem_cap, max(needed + (16 << 20), 32 << 20)))

    if n_kc == 1:
        out = pl.pallas_call(
            _make_single_chunk_kernel(compute_dtype),
            out_shape=jax.ShapeDtypeStruct((m, 1), jnp.int32),
            grid=(n_row,),
            in_specs=[pl.BlockSpec((tile_rows, c), lambda i: (i, 0))],
            out_specs=pl.BlockSpec((tile_rows, 1), lambda i: (i, 0)),
            compiler_params=pltpu.CompilerParams(
                dimension_semantics=("parallel",),
                vmem_limit_bytes=vmem_limit,
            ),
        )(logits_2d)
    else:
        out = pl.pallas_call(
            _make_online_kernel(c, tile_c, int(n_kc), fill, compute_dtype),
            out_shape=jax.ShapeDtypeStruct((m, 1), jnp.int32),
            grid=(n_row, n_kc),
            in_specs=[pl.BlockSpec((tile_rows, tile_c), lambda i, kc: (i, kc))],
            out_specs=pl.BlockSpec((tile_rows, 1), lambda i, kc: (i, 0)),
            scratch_shapes=[pltpu.VMEM((tile_rows, 1), compute_dtype),
                            pltpu.VMEM((tile_rows, 1), jnp.int32)],
            compiler_params=pltpu.CompilerParams(
                dimension_semantics=("parallel", "arbitrary"),
                vmem_limit_bytes=vmem_limit,
            ),
        )(logits_2d)
    return out[:, 0]


class BaseModelPallas:
    """JAX/Pallas counterpart of the PyTorch `BaseModel` base class."""

    def __init__(self, labels=None):
        # No parameters in the base class.
        del labels

    def forward(
        self,
        logits: jnp.ndarray,
        labels: Optional[jnp.ndarray] = None,
        compute_loss: bool = False,
        compute_predictions: bool = False,
    ) -> Dict[str, Optional[jnp.ndarray]]:
        output: Dict[str, Optional[jnp.ndarray]] = {"logits": logits}
        if compute_predictions:
            b, s, c = logits.shape
            flat = logits.reshape(b * s, c)
            preds = argmax_last_dim(flat)
            output["predictions"] = preds.reshape(b, s)
        if compute_loss and labels is not None:
            # TODO(synk): BaseModel.compute_loss raises NotImplementedError in
            # the reference PyTorch code, so no loss kernel is implemented.
            output["loss"] = None
        return output


if __name__ == "__main__":
    k1, k2, k3, k4 = jax.random.split(jax.random.PRNGKey(0), 4)
    model = BaseModelPallas()

    # Case 1: small shapes -> single row tile, single class chunk fast path.
    B, S, C = 2, 8, 32
    logits = jax.random.normal(k1, (B, S, C), dtype=jnp.float32)
    preds = jax.block_until_ready(
        model.forward(logits, compute_predictions=True)["predictions"])
    ref = jnp.argmax(logits, axis=-1).astype(jnp.int32)
    assert preds.shape == (B, S)
    assert bool(jnp.all(preds == ref))

    # Case 2: non-128-aligned class axis; no wrapper-side padding needed.
    B2, S2, C2 = 3, 5, 2500
    logits2 = jax.random.normal(k2, (B2, S2, C2), dtype=jnp.float32)
    preds2 = jax.block_until_ready(
        model.forward(logits2, compute_predictions=True)["predictions"])
    ref2 = jnp.argmax(logits2, axis=-1).astype(jnp.int32)
    assert preds2.shape == (B2, S2)
    assert bool(jnp.all(preds2 == ref2))

    # Case 3: large, ragged class axis -> exercises the online (multi-chunk)
    # path with in-kernel masking of the last chunk on every generation.
    B3, S3, C3 = 2, 4, 5000
    logits3 = jax.random.normal(k3, (B3, S3, C3), dtype=jnp.float32)
    preds3 = jax.block_until_ready(
        model.forward(logits3, compute_predictions=True)["predictions"])
    ref3 = jnp.argmax(logits3, axis=-1).astype(jnp.int32)
    assert preds3.shape == (B3, S3)
    assert bool(jnp.all(preds3 == ref3))

    # Case 4: bf16 logits -> native bf16 compare path on v6e/v7x (f32 on v5e).
    B4, S4, C4 = 2, 8, 512
    logits4 = jax.random.normal(k4, (B4, S4, C4),
                                dtype=jnp.float32).astype(jnp.bfloat16)
    preds4 = jax.block_until_ready(
        model.forward(logits4, compute_predictions=True)["predictions"])
    ref4 = jnp.argmax(logits4, axis=-1).astype(jnp.int32)
    assert preds4.shape == (B4, S4)
    assert bool(jnp.all(preds4 == ref4))

    print("KERNEL_OK")
</pallas_src>

<mosaic_0001>
module attributes {stable_mosaic.version = 11 : i64} {
  func.func @kernel(%arg0: i32, %arg1: memref<16x32xf32, #tpu.memory_space<vmem>>, %arg2: memref<16x1xi32, #tpu.memory_space<vmem>>) attributes {dimension_semantics = [#tpu.dimension_semantics<parallel>], iteration_bounds = array<i64: 1>, scalar_prefetch = 0 : i64, scratch_operands = 0 : i64, tpu.core_type = #tpu.core_type<tc>, window_params = [{transform_indices = @transform_0, window_bounds = array<i64: 16, 32>}, {transform_indices = @transform_1, window_bounds = array<i64: 16, 1>}]} {
    %c0 = arith.constant 0 : index
    %c0_0 = arith.constant 0 : index
    %0 = vector.load %arg1[%c0, %c0_0] : memref<16x32xf32, #tpu.memory_space<vmem>>, vector<16x32xf32>
    %cst = arith.constant dense<0xFF800000> : vector<16xf32>
    %1 = vector.multi_reduction <maximumf>, %0, %cst [1] : vector<16x32xf32> to vector<16xf32>
    %2 = vector.shape_cast %1 : vector<16xf32> to vector<16x1xf32>
    %3 = tpu.iota {dimensions = array<i32: 1>} : vector<16x32xi32>
    %4 = vector.broadcast %2 : vector<16x1xf32> to vector<16x32xf32>
    %5 = arith.cmpf oeq, %0, %4 : vector<16x32xf32>
    %c32_i32 = arith.constant 32 : i32
    %6 = vector.broadcast %c32_i32 : i32 to vector<16x32xi32>
    %7 = arith.select %5, %3, %6 : vector<16x32xi1>, vector<16x32xi32>
    %cst_1 = arith.constant dense<2147483647> : vector<16xi32>
    %8 = vector.multi_reduction <minsi>, %7, %cst_1 [1] : vector<16x32xi32> to vector<16xi32>
    %9 = vector.shape_cast %8 : vector<16xi32> to vector<16x1xi32>
    %c0_2 = arith.constant 0 : index
    %c0_3 = arith.constant 0 : index
    %10 = vector.load %arg2[%c0_2, %c0_3] : memref<16x1xi32, #tpu.memory_space<vmem>>, vector<16x1xi32>
    tpu.vector_store %arg2[%c0_2, %c0_3], %9 {strides = array<i32>} : memref<16x1xi32, #tpu.memory_space<vmem>>, vector<16x1xi32>,
    return
  }
  func.func @transform_0(%arg0: i32) -> (i32, i32) {
    %c0_i32 = arith.constant 0 : i32
    %c0_i32_0 = arith.constant 0 : i32
    return %arg0, %c0_i32 : i32, i32
  }
  func.func @transform_1(%arg0: i32) -> (i32, i32) {
    %c0_i32 = arith.constant 0 : i32
    %c0_i32_0 = arith.constant 0 : i32
    return %arg0, %c0_i32 : i32, i32
  }
}

</mosaic_0001>

<bundles_post_ra>
// kernel: tpu_custom_call.1
= control target key start
LH: loop header
LB: loop body
LE: loop exit
PB: predicated region body
PF: predicated region fallthrough
CT: control target
= control target key end

     0   :  { %6 = vsyncpa [#allocation3], 0  ;;  %s100_s6 = smov [#allocation2]   ;;  %s126_s0 = inlined_call_operand.hbm [shape: f32[16,32], index: 0, kind: input, shape index: {}]   ;;  %s127_s1 = inlined_call_operand.vmem [shape: s32[16,1], index: 1, kind: output, shape index: {}]  }
   0x1   :  { %s12_s7 = sshll.u32 %s100_s6, 4  ;;  %s13_s7 = int_to_ptr.vmem [resolvable:$true] %s12_s7 }
   0x2   :  { %s86_s8 = scalar_lea.vmem %s13_s7, 256  ;;  %p91_p1 = scmp.lt.s32.totalorder %s13_s7, %s13_s7 }
   0x3   :  { %p87_p0 = scmp.ne.s32.totalorder %s13_s7, %s86_s8  ;;  %p92_p2 = scmp.lt.s32.totalorder %s86_s8, %s86_s8 }
   0x5   :  { %p93_p3 = por %p92_p2, %p91_p1 }
   0x7   :  { %p94_p4 = pnand %p93_p3, %p87_p0 }
   0x9   :  { %97 = shalt.err (!%p94_p4)
}
   0xa   :  { %s101_s9 = smov 128   ;;  %s102_s10 = smov 8  }
   0xb   :  { %18 = dma.hbm_to_vmem [thread:$0]  %s126_s0, 256, %s13_s7, [#allocation3], %s101_s9, %s101_s9, %s102_s10  }
   0xc   :  { %98 = dma.done.wait [#allocation3], 256  }
   0xd   :  { %99 = vsyncadd [#allocation3], 4294967040  ;;  %vm24_vm0 = vcmask 261120   ;;  %v22_v0 = vld [vmem:[#allocation2] sm:$0xff]  ;;  %v23_v1 = vld [vmem:[#allocation2 + $0x8] sm:$0xff]  ;;  %v31_v4 = vlaneseq  ;;  %vm67_vm5 = vcmask 7168  }
   0xe   :  { %v25_v2 = vsel %vm24_vm0, %v22_v0, -inf  ;;  %v28_v3 = vsel %vm24_vm0, %v23_v1, -inf }
   0xf   :  { %26 = vmax.xlane.f32.xlu0 %v25_v2  ;;  %v32_v5 = vand.u32 127, %v31_v4 }
  0x13   :  { %29 = vmax.xlane.f32.xlu0 %v28_v3 }
  0x98   :  { %v27_v6 = vpop.xlane.xlu0 %26 }
  0x99   :  { %vm33_vm1 = vcmp.eq.f32.partialorder %v22_v0, %v27_v6 }
  0x9a   :  { %v35_v7 = vsel %vm33_vm1, %v32_v5, 32 }
  0x9b   :  { %v37_v8 = vsel %vm24_vm0, %v35_v7, 2147483647 }
  0x9c   :  { %v30_v9 = vpop.xlane.xlu0 %29  ;;  %v39_v10 = vshra.s32 %v37_v8, 16  ;;  %v38_v16 = vand.u32 65535, %v37_v8 }
  0x9d   :  { %vm34_vm2 = vcmp.eq.f32.partialorder %v23_v1, %v30_v9 }
  0x9e   :  { %v36_v11 = vsel %vm34_vm2, %v32_v5, 32  ;;  %v41_v12 = vcvt.s32.f32 %v39_v10  ;;  %v40_v18 = vcvt.s32.f32 %v38_v16 }
  0x9f   :  { %v52_v13 = vsel %vm24_vm0, %v36_v11, 2147483647 }
  0xa0   :  { %42 = vmin.xlane.f32.xlu1 %v41_v12  ;;  %v54_v14 = vshra.s32 %v52_v13, 16  ;;  %v53_v19 = vand.u32 65535, %v52_v13 }
  0xa2   :  { %v56_v15 = vcvt.s32.f32 %v54_v14  ;;  %v55_v22 = vcvt.s32.f32 %v53_v19 }
  0xa4   :  { %57 = vmin.xlane.f32.xlu1 %v56_v15 }
 0x129   :  { %v43_v17 = vpop.xlane.xlu1 %42 }
 0x12a   :  { %vm44_vm3 = vcmp.eq.f32.partialorder %v41_v12, %v43_v17  ;;  %v49_v24 = vcvt.f32.s32 %v43_v17 }
 0x12b   :  { %v45_v20 = vsel %vm44_vm3, %v40_v18, inf }
 0x12c   :  { %46 = vmin.xlane.f32.xlu0 %v45_v20  ;;  %v50_v26 = vshll.u32 %v49_v24, 16 }
 0x12d   :  { %v58_v21 = vpop.xlane.xlu1 %57 }
 0x12e   :  { %vm59_vm4 = vcmp.eq.f32.partialorder %v56_v15, %v58_v21  ;;  %v64_v27 = vcvt.f32.s32 %v58_v21 }
 0x12f   :  { %v60_v23 = vsel %vm59_vm4, %v55_v22, inf }
 0x130   :  { %61 = vmin.xlane.f32.xlu1 %v60_v23  ;;  %v65_v31 = vshll.u32 %v64_v27, 16 }
 0x1b5   :  { %v47_v25 = vpop.xlane.xlu0 %46 }
 0x1b6   :  { %v48_v28 = vcvt.f32.s32 %v47_v25 }
 0x1b8   :  { %v51_v29 = vadd.s32 %v50_v26, %v48_v28 }
 0x1b9   :  { %v62_v30 = vpop.xlane.xlu1 %61 }
 0x1ba   :  { %68 = vst.msk [vmem:[%s127_s1] sm:$0xff] %vm67_vm5, %v51_v29  ;;  %v63_v32 = vcvt.f32.s32 %v62_v30 }
 0x1bc   :  { %v66_v33 = vadd.s32 %v65_v31, %v63_v32 }
 0x1be   :  { %69 = vst.msk [vmem:[%s127_s1 + $0x8] sm:$0xff] %vm67_vm5, %v66_v33 }
 0x1bf   :  { %74 = vsyncpa [#allocation3], 1 }

</bundles_post_ra>
